<compile_context>
chip_gen: v7x
topology: tpu7x:2x2x1
jax: 0.10.0
libtpu: 0.0.40
codegen_flags: <defaults>
</compile_context>

<pallas_src>
import functools

import jax
import jax.numpy as jnp
from jax import lax
from jax.experimental import pallas as pl
from jax.experimental.pallas import tpu as pltpu


def _round_up(x, m):
    return ((x + m - 1) // m) * m


def _default_vmem_limit_bytes():
    """~75% of physical VMEM (96 MiB on v5e/v6e, 48 MiB on v7x); safe fallback."""
    try:
        cap = getattr(pltpu.get_tpu_info(), "vmem_capacity_bytes", None)
        if cap:
            return (int(cap) * 3) // 4
    except Exception:
        pass
    return 48 * 1024 * 1024


def _choose_time_chunk(S, Bp, Gp, Hp, vmem_budget_bytes):
    """Largest time chunk giving >=4 pipelined chunks that fits the VMEM budget."""
    def footprint(tc):
        return (2 * tc * Bp * Gp * 4      # double-buffered xw chunk (f32)
                + 2 * tc * Bp * Hp * 4    # double-buffered out slab (f32)
                + Hp * Gp * 2             # single-buffered W_hh^T (bf16)
                + 2 * Bp * Hp * 4)        # h/c carry scratch (f32)
    divisors = [d for d in range(1, S + 1) if S % d == 0]
    preferred = [d for d in divisors if S // d >= 4] or divisors
    fitting = [d for d in preferred if footprint(d) <= vmem_budget_bytes]
    return max(fitting) if fitting else min(preferred)


def _lstm_layer_kernel(xw_ref, whh_ref, out_ref, h_scr, c_scr, *, tc, unroll):
    """Runs `tc` timesteps of one LSTM layer for one (batch block, time chunk).

    xw_ref : (Tc, Bblk, 4Hp) f32   precomputed x_t @ W_ih^T + bias, time-major
    whh_ref: (Hp, 4Hp)       bf16  pre-transposed recurrent weights (resident)
    out_ref: (Tc, Bblk, Hp)  f32   hidden states for this chunk
    h_scr  : (Bblk, Hp)      f32   hidden state carried across time chunks
    c_scr  : (Bblk, Hp)      f32   cell state carried across time chunks
    """
    # Grid = (batch_blocks, time_chunks); reset the carry at the FIRST TIME
    # chunk of every batch block (axis 1 is the time axis).
    @pl.when(pl.program_id(1) == 0)
    def _():
        h_scr[...] = jnp.zeros_like(h_scr)
        c_scr[...] = jnp.zeros_like(c_scr)

    Hp = h_scr.shape[-1]
    whh = whh_ref[...]                       # (Hp, 4Hp) bf16, resident in VMEM

    def step(t, carry):
        h, c = carry
        # Only this bf16 MXU matmul sits on the serial critical path.
        gates = xw_ref[t] + jnp.dot(h.astype(jnp.bfloat16), whh,
                                    preferred_element_type=jnp.float32)
        i_g = jax.nn.sigmoid(gates[:, 0 * Hp:1 * Hp])   # lane-aligned slices
        f_g = jax.nn.sigmoid(gates[:, 1 * Hp:2 * Hp])
        g_g = jnp.tanh(gates[:, 2 * Hp:3 * Hp])
        o_g = jax.nn.sigmoid(gates[:, 3 * Hp:4 * Hp])
        c = f_g * c + i_g * g_g
        h = o_g * jnp.tanh(c)
        out_ref[t] = h.astype(out_ref.dtype)            # unmasked lane-dense store
        return (h, c)

    h, c = lax.fori_loop(0, tc, step, (h_scr[...], c_scr[...]), unroll=unroll)
    h_scr[...] = h
    c_scr[...] = c


def lstm_layer(xw, w_hh_t, *, time_chunk=None, batch_block=None):
    """Run one LSTM layer over the full (time-major, padded) sequence.

    xw     : (S, Bp, 4Hp) f32   precomputed input projection (bias included)
    w_hh_t : (Hp, 4Hp)    bf16  transposed recurrent weights
    returns: (S, Bp, Hp)  f32   full hidden-state sequence, time-major
    """
    S, Bp, Gp = xw.shape
    Hp = w_hh_t.shape[0]
    assert Gp == 4 * Hp and Hp % 128 == 0 and Bp % 8 == 0

    vmem_limit = _default_vmem_limit_bytes()
    tc = (_choose_time_chunk(S, Bp, Gp, Hp, (vmem_limit * 4) // 5)
          if time_chunk is None else time_chunk)
    assert S % tc == 0, (S, tc)
    n_chunks = S // tc

    b_blk = Bp if batch_block is None else batch_block
    assert Bp % b_blk == 0 and (b_blk % 8 == 0 or b_blk == Bp)
    n_bblk = Bp // b_blk

    unroll = max(1, min(tc, 8))

    return pl.pallas_call(
        functools.partial(_lstm_layer_kernel, tc=tc, unroll=unroll),
        out_shape=jax.ShapeDtypeStruct((S, Bp, Hp), jnp.float32),
        grid_spec=pltpu.PrefetchScalarGridSpec(
            num_scalar_prefetch=0,
            grid=(n_bblk, n_chunks),
            in_specs=[
                # xw time chunk for this batch block (double-buffered by default).
                pl.BlockSpec((tc, b_blk, Gp), lambda b, c: (c, b, 0)),
                # Resident recurrent weights: constant index_map -> single buffer.
                pl.BlockSpec((Hp, Gp), lambda b, c: (0, 0),
                             pipeline_mode=pl.Buffered(1)),
            ],
            out_specs=pl.BlockSpec((tc, b_blk, Hp), lambda b, c: (c, b, 0)),
            scratch_shapes=[
                pltpu.VMEM((b_blk, Hp), jnp.float32),   # h carry
                pltpu.VMEM((b_blk, Hp), jnp.float32),   # c carry
            ],
        ),
        compiler_params=pltpu.CompilerParams(
            # Batch blocks are independent (v7x megacore); time chunks are a
            # strict recurrence and must stay sequential.
            dimension_semantics=("parallel", "arbitrary"),
            vmem_limit_bytes=vmem_limit,
        ),
    )(xw, w_hh_t)


@functools.partial(jax.jit, static_argnums=(2, 3))
def lstm_forward(x, params, hidden_size, time_chunk):
    """Multi-layer LSTM forward; returns the last-timestep hidden state (B, H)."""
    B, S, _ = x.shape
    Bp = _round_up(B, 8)                       # sublane-aligned batch
    x = x.astype(jnp.float32)
    if Bp != B:
        x = jnp.pad(x, ((0, Bp - B), (0, 0), (0, 0)))
    h_seq = jnp.transpose(x, (1, 0, 2))        # (S, Bp, IN), time-major
    for (w_ih_t, w_hh_t, bias) in params:
        # Hoisted input projection: one big MXU matmul over the whole sequence.
        xw = jnp.einsum("sbi,ig->sbg", h_seq, w_ih_t,
                        preferred_element_type=jnp.float32) + bias
        h_seq = lstm_layer(xw, w_hh_t, time_chunk=time_chunk)
    # PyTorch forward: lstm_out[:, -1, :]  -> (batch, hidden_size)
    return h_seq[-1][:B, :hidden_size]


def _pad_gate_rows(w, H, Hp):
    """(4H, ...) -> (4Hp, ...): gate g's rows land at [g*Hp : g*Hp + H], rest 0."""
    pads = ((0, Hp - H),) + tuple((0, 0) for _ in range(w.ndim - 1))
    return jnp.concatenate(
        [jnp.pad(w[g * H:(g + 1) * H], pads) for g in range(4)], axis=0)


class LSTMPallas:
    """JAX/Pallas equivalent of the PyTorch LSTM module's forward pass."""

    def __init__(self, input_size, hidden_size, num_layers, window_size,
                 pred_length, output_size=1, *, key):
        self.input_size = input_size
        self.hidden_size = hidden_size
        self.num_layers = num_layers
        self.window_size = window_size
        self.pred_length = pred_length
        self.output_size = output_size

        H = hidden_size
        Hp = _round_up(H, 128)                 # lane-aligned hidden size
        self.hidden_pad = Hp

        # PyTorch-style init: uniform(-1/sqrt(H), 1/sqrt(H)), deterministic.
        bound = 1.0 / jnp.sqrt(jnp.float32(hidden_size))
        raw_params, params = [], []
        for layer in range(num_layers):
            in_dim = input_size if layer == 0 else hidden_size
            key, k1, k2, k3, k4 = jax.random.split(key, 5)
            w_ih = jax.random.uniform(k1, (4 * H, in_dim), jnp.float32, -bound, bound)
            w_hh = jax.random.uniform(k2, (4 * H, H), jnp.float32, -bound, bound)
            b_ih = jax.random.uniform(k3, (4 * H,), jnp.float32, -bound, bound)
            b_hh = jax.random.uniform(k4, (4 * H,), jnp.float32, -bound, bound)

            # Unpadded f32 params (for the pure-JAX reference).
            raw_params.append((w_ih.T, w_hh.T, b_ih + b_hh))

            # Padded, pre-transposed kernel params (gate order [i, f, g, o],
            # each gate padded to Hp so gate slices stay lane-aligned; pads are
            # zero so padded h/c stay exactly 0 through the recurrence).
            w_ih_p = _pad_gate_rows(w_ih, H, Hp)                     # (4Hp, in)
            if layer > 0:
                w_ih_p = jnp.pad(w_ih_p, ((0, 0), (0, Hp - H)))      # (4Hp, Hp)
            w_hh_p = jnp.pad(_pad_gate_rows(w_hh, H, Hp),
                             ((0, 0), (0, Hp - H)))                  # (4Hp, Hp)
            bias_p = _pad_gate_rows(b_ih + b_hh, H, Hp)              # (4Hp,)
            params.append((w_ih_p.T,                                 # (in|Hp, 4Hp) f32
                           w_hh_p.T.astype(jnp.bfloat16),            # (Hp, 4Hp) bf16
                           bias_p))                                   # (4Hp,)   f32
        self.raw_params = tuple(raw_params)
        self.params = tuple(params)

    def __call__(self, x, cs=None, *, time_chunk=None):
        # x: (batch, seq, input_size) -> (batch, hidden_size)
        return lstm_forward(x, self.params, self.hidden_size, time_chunk)


def _reference_lstm(x, raw_params, *, bf16_recurrent):
    """Pure-JAX reference (lax.scan over time).

    bf16_recurrent=True replicates the kernel's math exactly (bf16 recurrent
    matmul operands, f32 accumulation / gates); False is the plain f32 model.
    """
    h_seq = jnp.transpose(x.astype(jnp.float32), (1, 0, 2))   # (S, B, IN)
    B = x.shape[0]
    for (w_ih_t, w_hh_t, bias) in raw_params:
        H = w_hh_t.shape[0]
        w_rec = w_hh_t.astype(jnp.bfloat16) if bf16_recurrent else w_hh_t
        xw = jnp.einsum("sbi,ig->sbg", h_seq, w_ih_t,
                        preferred_element_type=jnp.float32) + bias

        def step(carry, xw_t, w_rec=w_rec, H=H):
            h, c = carry
            lhs = h.astype(jnp.bfloat16) if bf16_recurrent else h
            gates = xw_t + jnp.dot(lhs, w_rec, preferred_element_type=jnp.float32)
            i = jax.nn.sigmoid(gates[:, 0 * H:1 * H])
            f = jax.nn.sigmoid(gates[:, 1 * H:2 * H])
            g = jnp.tanh(gates[:, 2 * H:3 * H])
            o = jax.nn.sigmoid(gates[:, 3 * H:4 * H])
            c = f * c + i * g
            h = o * jnp.tanh(c)
            return (h, c), h

        init = (jnp.zeros((B, H), jnp.float32), jnp.zeros((B, H), jnp.float32))
        _, h_seq = lax.scan(step, init, xw)
    return h_seq[-1]


if __name__ == "__main__":
    # Small shapes consistent with the module's forward:
    # x: (batch, seq_length, input_size)
    batch, seq, input_size = 2, 8, 4
    hidden_size, num_layers = 32, 2
    window_size, pred_length = seq, 1

    key = jax.random.PRNGKey(0)
    key, xkey, pkey = jax.random.split(key, 3)
    x = jax.random.normal(xkey, (batch, seq, input_size), jnp.float32)

    model = LSTMPallas(input_size, hidden_size, num_layers, window_size,
                       pred_length, output_size=1, key=pkey)

    out = jax.block_until_ready(model(x))
    assert out.shape == (batch, hidden_size), out.shape

    # Exact-math reference (same bf16 recurrent matmul): validates the kernel.
    ref_match = _reference_lstm(x, model.raw_params, bf16_recurrent=True)
    err_match = float(jnp.max(jnp.abs(out - ref_match)))
    assert err_match < 5e-4, err_match

    # Full-f32 reference: bounds the deliberate bf16 drift.
    ref_f32 = _reference_lstm(x, model.raw_params, bf16_recurrent=False)
    err_f32 = float(jnp.max(jnp.abs(out - ref_f32)))
    assert err_f32 < 1e-1, err_f32

    print("KERNEL_OK")
</pallas_src>

<mosaic_0001>
module attributes {stable_mosaic.version = 11 : i64} {
  func.func @_lstm_layer_kernel(%arg0: i32, %arg1: i32, %arg2: memref<2x8x512xf32, #tpu.memory_space<vmem>>, %arg3: memref<128x512xbf16, #tpu.memory_space<vmem>>, %arg4: memref<2x8x128xf32, #tpu.memory_space<vmem>>, %arg5: memref<8x128xf32, #tpu.memory_space<vmem>>, %arg6: memref<8x128xf32, #tpu.memory_space<vmem>>) attributes {dimension_semantics = [#tpu.dimension_semantics<parallel>, #tpu.dimension_semantics<arbitrary>], iteration_bounds = array<i64: 1, 4>, scalar_prefetch = 0 : i64, scratch_operands = 2 : i64, tpu.core_type = #tpu.core_type<tc>, window_params = [{transform_indices = @transform_0, window_bounds = array<i64: 2, 8, 512>}, {pipeline_mode = #tpu.pipeline_mode<synchronous>, transform_indices = @transform_1, window_bounds = array<i64: 128, 512>}, {transform_indices = @transform_2, window_bounds = array<i64: 2, 8, 128>}]} {
    %c0_i32 = arith.constant 0 : i32
    %0 = arith.cmpi eq, %arg1, %c0_i32 : i32
    %1 = arith.extui %0 : i1 to i32
    %c0_i32_0 = arith.constant 0 : i32
    %2 = arith.cmpi ne, %1, %c0_i32_0 : i32
    scf.if %2 {
      %cst_26 = arith.constant 0.000000e+00 : f32
      %78 = vector.broadcast %cst_26 : f32 to vector<8x128xf32>
      %c0_27 = arith.constant 0 : index
      %c0_28 = arith.constant 0 : index
      %79 = vector.load %arg5[%c0_27, %c0_28] : memref<8x128xf32, #tpu.memory_space<vmem>>, vector<8x128xf32>
      tpu.vector_store %arg5[%c0_27, %c0_28], %78 {strides = array<i32>} : memref<8x128xf32, #tpu.memory_space<vmem>>, vector<8x128xf32>,
      %cst_29 = arith.constant 0.000000e+00 : f32
      %80 = vector.broadcast %cst_29 : f32 to vector<8x128xf32>
      %c0_30 = arith.constant 0 : index
      %c0_31 = arith.constant 0 : index
      %81 = vector.load %arg6[%c0_30, %c0_31] : memref<8x128xf32, #tpu.memory_space<vmem>>, vector<8x128xf32>
      tpu.vector_store %arg6[%c0_30, %c0_31], %80 {strides = array<i32>} : memref<8x128xf32, #tpu.memory_space<vmem>>, vector<8x128xf32>,
    } else {
    }
    %c0 = arith.constant 0 : index
    %c0_1 = arith.constant 0 : index
    %3 = vector.load %arg3[%c0, %c0_1] : memref<128x512xbf16, #tpu.memory_space<vmem>>, vector<128x512xbf16>
    %c0_2 = arith.constant 0 : index
    %c0_3 = arith.constant 0 : index
    %4 = vector.load %arg5[%c0_2, %c0_3] : memref<8x128xf32, #tpu.memory_space<vmem>>, vector<8x128xf32>
    %c0_4 = arith.constant 0 : index
    %c0_5 = arith.constant 0 : index
    %5 = vector.load %arg6[%c0_4, %c0_5] : memref<8x128xf32, #tpu.memory_space<vmem>>, vector<8x128xf32>
    %c0_i32_6 = arith.constant 0 : i32
    %6 = arith.index_cast %c0_i32_6 : i32 to index
    %c0_7 = arith.constant 0 : index
    %c0_8 = arith.constant 0 : index
    %7 = vector.load %arg2[%6, %c0_7, %c0_8] : memref<2x8x512xf32, #tpu.memory_space<vmem>>, vector<1x8x512xf32>
    %8 = vector.shape_cast %7 : vector<1x8x512xf32> to vector<8x512xf32>
    %9 = arith.truncf %4 : vector<8x128xf32> to vector<8x128xbf16>
    %cst = arith.constant dense<0.000000e+00> : vector<8x512xf32>
    %10 = tpu.matmul %9, %3, %cst {dimension_numbers = #tpu.dot_dimension_numbers<[1], [0], [0], [1], [0, 0, 1, 1], [], []>} : vector<8x128xbf16>, vector<128x512xbf16>, vector<8x512xf32> -> vector<8x512xf32>
    %11 = arith.addf %8, %10 : vector<8x512xf32>
    %12 = vector.extract_strided_slice %11 {offsets = [0, 0], sizes = [8, 128], strides = [1, 1]} : vector<8x512xf32> to vector<8x128xf32>
    %13 = arith.negf %12 : vector<8x128xf32>
    %14 = math.exp %13 : vector<8x128xf32>
    %cst_9 = arith.constant 1.000000e+00 : f32
    %15 = vector.broadcast %cst_9 : f32 to vector<8x128xf32>
    %16 = arith.addf %15, %14 : vector<8x128xf32>
    %17 = arith.divf %15, %16 : vector<8x128xf32>
    %18 = vector.extract_strided_slice %11 {offsets = [0, 128], sizes = [8, 128], strides = [1, 1]} : vector<8x512xf32> to vector<8x128xf32>
    %19 = arith.negf %18 : vector<8x128xf32>
    %20 = math.exp %19 : vector<8x128xf32>
    %cst_10 = arith.constant 1.000000e+00 : f32
    %21 = vector.broadcast %cst_10 : f32 to vector<8x128xf32>
    %22 = arith.addf %21, %20 : vector<8x128xf32>
    %23 = arith.divf %21, %22 : vector<8x128xf32>
    %24 = vector.extract_strided_slice %11 {offsets = [0, 256], sizes = [8, 128], strides = [1, 1]} : vector<8x512xf32> to vector<8x128xf32>
    %25 = math.tanh %24 : vector<8x128xf32>
    %26 = vector.extract_strided_slice %11 {offsets = [0, 384], sizes = [8, 128], strides = [1, 1]} : vector<8x512xf32> to vector<8x128xf32>
    %27 = arith.negf %26 : vector<8x128xf32>
    %28 = math.exp %27 : vector<8x128xf32>
    %cst_11 = arith.constant 1.000000e+00 : f32
    %29 = vector.broadcast %cst_11 : f32 to vector<8x128xf32>
    %30 = arith.addf %29, %28 : vector<8x128xf32>
    %31 = arith.divf %29, %30 : vector<8x128xf32>
    %32 = arith.mulf %23, %5 : vector<8x128xf32>
    %33 = arith.mulf %17, %25 : vector<8x128xf32>
    %34 = arith.addf %32, %33 : vector<8x128xf32>
    %35 = math.tanh %34 : vector<8x128xf32>
    %36 = arith.mulf %31, %35 : vector<8x128xf32>
    %37 = arith.index_cast %c0_i32_6 : i32 to index
    %c0_12 = arith.constant 0 : index
    %c0_13 = arith.constant 0 : index
    %38 = vector.load %arg4[%37, %c0_12, %c0_13] : memref<2x8x128xf32, #tpu.memory_space<vmem>>, vector<1x8x128xf32>
    %39 = vector.shape_cast %38 : vector<1x8x128xf32> to vector<8x128xf32>
    %40 = vector.shape_cast %36 : vector<8x128xf32> to vector<1x8x128xf32>
    tpu.vector_store %arg4[%37, %c0_12, %c0_13], %40 {strides = array<i32>} : memref<2x8x128xf32, #tpu.memory_space<vmem>>, vector<1x8x128xf32>,
    %c1_i32 = arith.constant 1 : i32
    %41 = arith.index_cast %c1_i32 : i32 to index
    %c0_14 = arith.constant 0 : index
    %c0_15 = arith.constant 0 : index
    %42 = vector.load %arg2[%41, %c0_14, %c0_15] : memref<2x8x512xf32, #tpu.memory_space<vmem>>, vector<1x8x512xf32>
    %43 = vector.shape_cast %42 : vector<1x8x512xf32> to vector<8x512xf32>
    %44 = arith.truncf %36 : vector<8x128xf32> to vector<8x128xbf16>
    %cst_16 = arith.constant dense<0.000000e+00> : vector<8x512xf32>
    %45 = tpu.matmul %44, %3, %cst_16 {dimension_numbers = #tpu.dot_dimension_numbers<[1], [0], [0], [1], [0, 0, 1, 1], [], []>} : vector<8x128xbf16>, vector<128x512xbf16>, vector<8x512xf32> -> vector<8x512xf32>
    %46 = arith.addf %43, %45 : vector<8x512xf32>
    %47 = vector.extract_strided_slice %46 {offsets = [0, 0], sizes = [8, 128], strides = [1, 1]} : vector<8x512xf32> to vector<8x128xf32>
    %48 = arith.negf %47 : vector<8x128xf32>
    %49 = math.exp %48 : vector<8x128xf32>
    %cst_17 = arith.constant 1.000000e+00 : f32
    %50 = vector.broadcast %cst_17 : f32 to vector<8x128xf32>
    %51 = arith.addf %50, %49 : vector<8x128xf32>
    %52 = arith.divf %50, %51 : vector<8x128xf32>
    %53 = vector.extract_strided_slice %46 {offsets = [0, 128], sizes = [8, 128], strides = [1, 1]} : vector<8x512xf32> to vector<8x128xf32>
    %54 = arith.negf %53 : vector<8x128xf32>
    %55 = math.exp %54 : vector<8x128xf32>
    %cst_18 = arith.constant 1.000000e+00 : f32
    %56 = vector.broadcast %cst_18 : f32 to vector<8x128xf32>
    %57 = arith.addf %56, %55 : vector<8x128xf32>
    %58 = arith.divf %56, %57 : vector<8x128xf32>
    %59 = vector.extract_strided_slice %46 {offsets = [0, 256], sizes = [8, 128], strides = [1, 1]} : vector<8x512xf32> to vector<8x128xf32>
    %60 = math.tanh %59 : vector<8x128xf32>
    %61 = vector.extract_strided_slice %46 {offsets = [0, 384], sizes = [8, 128], strides = [1, 1]} : vector<8x512xf32> to vector<8x128xf32>
    %62 = arith.negf %61 : vector<8x128xf32>
    %63 = math.exp %62 : vector<8x128xf32>
    %cst_19 = arith.constant 1.000000e+00 : f32
    %64 = vector.broadcast %cst_19 : f32 to vector<8x128xf32>
    %65 = arith.addf %64, %63 : vector<8x128xf32>
    %66 = arith.divf %64, %65 : vector<8x128xf32>
    %67 = arith.mulf %58, %34 : vector<8x128xf32>
    %68 = arith.mulf %52, %60 : vector<8x128xf32>
    %69 = arith.addf %67, %68 : vector<8x128xf32>
    %70 = math.tanh %69 : vector<8x128xf32>
    %71 = arith.mulf %66, %70 : vector<8x128xf32>
    %72 = arith.index_cast %c1_i32 : i32 to index
    %c0_20 = arith.constant 0 : index
    %c0_21 = arith.constant 0 : index
    %73 = vector.load %arg4[%72, %c0_20, %c0_21] : memref<2x8x128xf32, #tpu.memory_space<vmem>>, vector<1x8x128xf32>
    %74 = vector.shape_cast %73 : vector<1x8x128xf32> to vector<8x128xf32>
    %75 = vector.shape_cast %71 : vector<8x128xf32> to vector<1x8x128xf32>
    tpu.vector_store %arg4[%72, %c0_20, %c0_21], %75 {strides = array<i32>} : memref<2x8x128xf32, #tpu.memory_space<vmem>>, vector<1x8x128xf32>,
    %c2_i32 = arith.constant 2 : i32
    %c0_22 = arith.constant 0 : index
    %c0_23 = arith.constant 0 : index
    %76 = vector.load %arg5[%c0_22, %c0_23] : memref<8x128xf32, #tpu.memory_space<vmem>>, vector<8x128xf32>
    tpu.vector_store %arg5[%c0_22, %c0_23], %71 {strides = array<i32>} : memref<8x128xf32, #tpu.memory_space<vmem>>, vector<8x128xf32>,
    %c0_24 = arith.constant 0 : index
    %c0_25 = arith.constant 0 : index
    %77 = vector.load %arg6[%c0_24, %c0_25] : memref<8x128xf32, #tpu.memory_space<vmem>>, vector<8x128xf32>
    tpu.vector_store %arg6[%c0_24, %c0_25], %69 {strides = array<i32>} : memref<8x128xf32, #tpu.memory_space<vmem>>, vector<8x128xf32>,
    return
  }
  func.func @transform_0(%arg0: i32, %arg1: i32) -> (i32, i32, i32) {
    %c0_i32 = arith.constant 0 : i32
    %c0_i32_0 = arith.constant 0 : i32
    return %arg1, %arg0, %c0_i32 : i32, i32, i32
  }
  func.func @transform_1(%arg0: i32, %arg1: i32) -> (i32, i32) {
    %c0_i32 = arith.constant 0 : i32
    %c0_i32_0 = arith.constant 0 : i32
    %c0_i32_1 = arith.constant 0 : i32
    return %c0_i32, %c0_i32_0 : i32, i32
  }
  func.func @transform_2(%arg0: i32, %arg1: i32) -> (i32, i32, i32) {
    %c0_i32 = arith.constant 0 : i32
    %c0_i32_0 = arith.constant 0 : i32
    return %arg1, %arg0, %c0_i32 : i32, i32, i32
  }
}

</mosaic_0001>

<bundles_post_ra>
// kernel: lstm_forward.2
= control target key start
LH: loop header
LB: loop body
LE: loop exit
PB: predicated region body
PF: predicated region fallthrough
CT: control target
= control target key end

     0   :  { %s909_s9 = smov 0   ;;  %s911_s10 = smov 0   ;;  %s1088_s0 = inlined_call_operand.vmem [shape: f32[8,8,512], index: 0, kind: input, shape index: {}]   ;;  %s1089_s1 = inlined_call_operand.vmem [shape: bf16[128,512], index: 1, kind: input, shape index: {}]   ;;  %s1090_s2 = inlined_call_operand.vmem [shape: f32[8,8,128], index: 2, kind: output, shape index: {}]  }
   0x1   :  { %s913_s11 = smov 0  }
   0x2 LB: > { %s21_s12 = sadd.s32 1, %s886_s10  ;;  %p709_p0 = scmp.ge.s32.totalorder %s890_s11, 1  ;;  %s890_s11 = sphi %s913_s11, %s12_s11   ;;  %s886_s10 = sphi %s911_s10, %s1092_s10   ;;  %s882_s9 = sphi %s909_s9, %s1091_s9  }
   0x3   : > { %p22_p1 = scmp.ge.s32.totalorder %s21_s12, 4  ;;  %p134_p2 = scmp.lt.s32.totalorder %s890_s11, 5 }
   0x5   : > { %s1094_s12 = smov (%p22_p1, %s21_s12), 0  ;;  %p135_p3 = pnand %p709_p0, %p134_p2 }
   0x6   : > { %s710_s13 = sshll.u32 (!%p135_p3), %s882_s9, 1  ;;  %p715_p5 = scmp.ne.s32.totalorder (!%p135_p3), %s882_s9, 0 }
   0x7   : > { %138 = sbr.rel (%p135_p3) target bundleno = 574 (0x23e), region = 28  ;;  %p165_p4 = scmp.lt.s32.totalorder (!%p135_p3), %s710_s13, 7 }
   0xe   : > { %s1096_s13 = smov (!%p165_p4, %s710_s13), 7  ;;  %188 = sbr.rel (%p715_p5) target bundleno = 21 (0x15), region = 32 }
   0xf   : > { %s761_s14 = sshll.u32 %s1096_s13, 5  ;;  %s714_s15 = sshll.u32 %s1096_s13, 3  ;;  %v892_v0 = vmov (!%p715_p5), 0.0  }
  0x10   : > { %s930_s18 = scalar_lea.vmem %s1088_s0, %s761_s14  ;;  %s935_s21 = scalar_lea.vmem %s1090_s2, %s714_s15  ;;  %189 = vst [vmem:[#allocation2] sm:$0xff] (!%p715_p5), %v892_v0  ;;  %190 = vst [vmem:[#allocation3] sm:$0xff] (!%p715_p5), %v892_v0 }
  0x15 PF: > { %v940_v1 = vld [vmem:[%s1089_s1 + $0x4] ss:$16 sps:$4 sm:$0xff]   ;;  %v945_v2 = vld [vmem:[%s1089_s1] ss:$16 sps:$4 sm:$0xff]   ;;  %v893_v3 = vmov 0   ;;  %v226_v37 = vld [vmem:[%s930_s18 + $0x8] sm:$0xff] }
  0x16   : > { %422 = vmatprep.mubr.bf16.mxu0 %v893_v3  ;;  %463 = vmatprep.mubr.bf16.mxu1 %v893_v3  ;;  %v953_v4 = vld [vmem:[%s1089_s1 + $0x24] ss:$16 sps:$4 sm:$0xff]   ;;  %v959_v5 = vld [vmem:[%s1089_s1 + $0x20] ss:$16 sps:$4 sm:$0xff]   ;;  %v799_v7 = vld [vmem:[%s1089_s1 + $0xc] ss:$16 sps:$4 sm:$0xff]  }
  0x17   : > { %390 = vmatprep.subr.bf16.mxu0 %v940_v1  ;;  %v965_v6 = vld [vmem:[%s1089_s1 + $0x44] ss:$16 sps:$4 sm:$0xff]   ;;  %v973_v8 = vld [vmem:[%s1089_s1 + $0x8] ss:$16 sps:$4 sm:$0xff]   ;;  %v979_v9 = vld [vmem:[%s1089_s1 + $0x40] ss:$16 sps:$4 sm:$0xff]   ;;  %431 = vmatprep.subr.bf16.mxu1 %v799_v7 }
  0x18   : > { %391 = vmatpush1.bf16.msra.mxu0 %v945_v2  ;;  %v985_v10 = vld [vmem:[%s1089_s1 + $0x64] ss:$16 sps:$4 sm:$0xff]   ;;  %432 = vmatpush1.bf16.msra.mxu1 %v973_v8  ;;  %v805_v11 = vld [vmem:[%s1089_s1 + $0x2c] ss:$16 sps:$4 sm:$0xff]   ;;  %v808_v12 = vld [vmem:[%s1089_s1 + $0x28] ss:$16 sps:$4 sm:$0xff]  }
  0x19   : > { %392 = vmatprep.subr.bf16.mxu0 %v953_v4  ;;  %433 = vmatprep.subr.bf16.mxu1 %v805_v11  ;;  %v801_v13 = vld [vmem:[%s1089_s1 + $0x60] ss:$16 sps:$4 sm:$0xff]   ;;  %v803_v14 = vld [vmem:[%s1089_s1 + $0x84] ss:$16 sps:$4 sm:$0xff]   ;;  %v811_v15 = vld [vmem:[%s1089_s1 + $0x4c] ss:$16 sps:$4 sm:$0xff]  }
  0x1a   : > { %v814_v16 = vld [vmem:[%s1089_s1 + $0x48] ss:$16 sps:$4 sm:$0xff]   ;;  %v817_v17 = vld [vmem:[%s1089_s1 + $0x6c] ss:$16 sps:$4 sm:$0xff]   ;;  %v807_v18 = vld [vmem:[%s1089_s1 + $0x80] ss:$16 sps:$4 sm:$0xff]  }
  0x1b   : > { %v809_v19 = vld [vmem:[%s1089_s1 + $0xa4] ss:$16 sps:$4 sm:$0xff]   ;;  %v820_v20 = vld [vmem:[%s1089_s1 + $0x68] ss:$16 sps:$4 sm:$0xff]   ;;  %v823_v21 = vld [vmem:[%s1089_s1 + $0x8c] ss:$16 sps:$4 sm:$0xff]  }
  0x1c   : > { %393 = vmatpush1.bf16.msra.mxu0 %v959_v5  ;;  %434 = vmatpush1.bf16.msra.mxu1 %v808_v12  ;;  %v813_v22 = vld [vmem:[%s1089_s1 + $0xa0] ss:$16 sps:$4 sm:$0xff]   ;;  %v815_v23 = vld [vmem:[%s1089_s1 + $0xc4] ss:$16 sps:$4 sm:$0xff]   ;;  %v826_v24 = vld [vmem:[%s1089_s1 + $0x88] ss:$16 sps:$4 sm:$0xff]  }
  0x1d   : > { %394 = vmatprep.subr.bf16.mxu0 %v965_v6  ;;  %435 = vmatprep.subr.bf16.mxu1 %v811_v15  ;;  %v827_v25 = vld [vmem:[%s1089_s1 + $0xac] ss:$16 sps:$4 sm:$0xff]   ;;  %v819_v26 = vld [vmem:[%s1089_s1 + $0xc0] ss:$16 sps:$4 sm:$0xff]   ;;  %v821_v27 = vld [vmem:[%s1089_s1 + $0xe4] ss:$16 sps:$4 sm:$0xff]  }
  0x1e   : > { %v829_v28 = vld [vmem:[%s1089_s1 + $0xa8] ss:$16 sps:$4 sm:$0xff]   ;;  %v830_v29 = vld [vmem:[%s1089_s1 + $0xcc] ss:$16 sps:$4 sm:$0xff]   ;;  %v825_v30 = vld [vmem:[%s1089_s1 + $0xe0] ss:$16 sps:$4 sm:$0xff]  }
  0x1f   : > { %v223_v31 = vld [vmem:[#allocation2] sm:$0xff]  ;;  %v832_v32 = vld [vmem:[%s1089_s1 + $0xc8] ss:$16 sps:$4 sm:$0xff]   ;;  %v833_v33 = vld [vmem:[%s1089_s1 + $0xec] ss:$16 sps:$4 sm:$0xff]  }
  0x20   : > { %395 = vmatpush1.bf16.msra.mxu0 %v979_v9  ;;  %436 = vmatpush1.bf16.msra.mxu1 %v814_v16  ;;  %v229_v34 = vpack.c.bf16 %v223_v31, %v223_v31  ;;  %v835_v35 = vld [vmem:[%s1089_s1 + $0xe8] ss:$16 sps:$4 sm:$0xff]   ;;  %v225_v36 = vld [vmem:[%s930_s18] sm:$0xff]  ;;  %v227_v52 = vld [vmem:[%s930_s18 + $0x10] sm:$0xff] }
  0x21   : > { %396 = vmatprep.subr.bf16.mxu0 %v985_v10  ;;  %437 = vmatprep.subr.bf16.mxu1 %v817_v17  ;;  %v228_v46 = vld [vmem:[%s930_s18 + $0x18] sm:$0xff]  ;;  %v224_v61 = vld [vmem:[#allocation3] sm:$0xff] }
  0x24   : > { %397 = vmatpush1.bf16.msra.mxu0 %v801_v13  ;;  %438 = vmatpush1.bf16.msra.mxu1 %v820_v20 }
  0x25   : > { %398 = vmatprep.subr.bf16.mxu0 %v803_v14  ;;  %439 = vmatprep.subr.bf16.mxu1 %v823_v21 }
  0x28   : > { %399 = vmatpush1.bf16.msra.mxu0 %v807_v18  ;;  %440 = vmatpush1.bf16.msra.mxu1 %v826_v24 }
  0x29   : > { %400 = vmatprep.subr.bf16.mxu0 %v809_v19  ;;  %441 = vmatprep.subr.bf16.mxu1 %v827_v25 }
  0x2c   : > { %401 = vmatpush1.bf16.msra.mxu0 %v813_v22  ;;  %442 = vmatpush1.bf16.msra.mxu1 %v829_v28 }
  0x2d   : > { %402 = vmatprep.subr.bf16.mxu0 %v815_v23  ;;  %443 = vmatprep.subr.bf16.mxu1 %v830_v29 }
  0x30   : > { %403 = vmatpush1.bf16.msra.mxu0 %v819_v26  ;;  %444 = vmatpush1.bf16.msra.mxu1 %v832_v32 }
  0x31   : > { %404 = vmatprep.subr.bf16.mxu0 %v821_v27  ;;  %445 = vmatprep.subr.bf16.mxu1 %v833_v33 }
  0x34   : > { %405 = vmatpush1.bf16.msra.mxu0 %v825_v30  ;;  %446 = vmatpush1.bf16.msra.mxu1 %v835_v35 }
  0x35   : > { %507 = vmatprep.subr.bf16.mxu0 %v940_v1  ;;  %548 = vmatprep.subr.bf16.mxu1 %v799_v7 }
  0x37   : > { %423 = vmatmul.mubr.bf16.vlgmr.msra.gmra.mrb[0].mxu0 %v229_v34  ;;  %464 = vmatmul.mubr.bf16.vlgmr.msra.gmra.mrb[0].mxu1 %v229_v34 }
  0x38   : > { %508 = vmatpush1.bf16.msra.mxu0 %v945_v2  ;;  %539 = vmatprep.mubr.bf16.mxu0 %v893_v3 }
  0x39   : > { %509 = vmatprep.subr.bf16.mxu0 %v953_v4  ;;  %549 = vmatpush1.bf16.msra.mxu1 %v973_v8  ;;  %v751_v8 = vld [vmem:[%s930_s18 + $0x20] sm:$0xff] }
  0x3a   : > { %550 = vmatprep.subr.bf16.mxu1 %v805_v11  ;;  %580 = vmatprep.mubr.bf16.mxu1 %v893_v3 }
  0x3c   : > { %510 = vmatpush1.bf16.msra.mxu0 %v959_v5 }
  0x3d   : > { %511 = vmatprep.subr.bf16.mxu0 %v965_v6  ;;  %551 = vmatpush1.bf16.msra.mxu1 %v808_v12 }
  0x3e   : > { %552 = vmatprep.subr.bf16.mxu1 %v811_v15 }
  0x40   : > { %512 = vmatpush1.bf16.msra.mxu0 %v979_v9  ;;  %v752_v9 = vld [vmem:[%s930_s18 + $0x28] sm:$0xff] }
  0x41   : > { %513 = vmatprep.subr.bf16.mxu0 %v985_v10  ;;  %553 = vmatpush1.bf16.msra.mxu1 %v814_v16 }
  0x42   : > { %554 = vmatprep.subr.bf16.mxu1 %v817_v17 }
  0x44   : > { %514 = vmatpush1.bf16.msra.mxu0 %v801_v13 }
  0x45   : > { %515 = vmatprep.subr.bf16.mxu0 %v803_v14  ;;  %555 = vmatpush1.bf16.msra.mxu1 %v820_v20 }
  0x46   : > { %556 = vmatprep.subr.bf16.mxu1 %v823_v21 }
  0x48   : > { %516 = vmatpush1.bf16.msra.mxu0 %v807_v18 }
  0x49   : > { %517 = vmatprep.subr.bf16.mxu0 %v809_v19  ;;  %557 = vmatpush1.bf16.msra.mxu1 %v826_v24  ;;  %v753_v24 = vld [vmem:[%s930_s18 + $0x30] sm:$0xff] }
  0x4a   : > { %558 = vmatprep.subr.bf16.mxu1 %v827_v25 }
  0x4c   : > { %518 = vmatpush1.bf16.msra.mxu0 %v813_v22  ;;  %v754_v22 = vld [vmem:[%s930_s18 + $0x38] sm:$0xff] }
  0x4d   : > { %519 = vmatprep.subr.bf16.mxu0 %v815_v23  ;;  %559 = vmatpush1.bf16.msra.mxu1 %v829_v28 }
  0x4e   : > { %560 = vmatprep.subr.bf16.mxu1 %v830_v29 }
  0x50   : > { %520 = vmatpush1.bf16.msra.mxu0 %v819_v26 }
  0x51   : > { %521 = vmatprep.subr.bf16.mxu0 %v821_v27  ;;  %561 = vmatpush1.bf16.msra.mxu1 %v832_v32 }
  0x52   : > { %562 = vmatprep.subr.bf16.mxu1 %v833_v33 }
  0x54   : > { %522 = vmatpush1.bf16.msra.mxu0 %v825_v30 }
  0x55   : > { %563 = vmatpush1.bf16.msra.mxu1 %v835_v35 }
 0x10a   : > { %v424_v38 = vpop.f32.mrb[0].mxu0  ;;  %v465_v47 = vpop.f32.mrb[0].mxu1 }
 0x10b   : > { %v472_v39 = vadd.f32 %v424_v38, %v225_v36  ;;  %v426_v40 = vpop.f32.mrb[1].mxu0  ;;  %v467_v48 = vpop.f32.mrb[1].mxu1  ;;  %v474_v54 = vadd.f32 %v465_v47, %v227_v52 }
 0x10c   : > { %v473_v41 = vadd.f32 %v426_v40, %v226_v37  ;;  %v428_v42 = vpop.f32.mrb[2].mxu0  ;;  %v475_v49 = vadd.f32 %v467_v48, %v228_v46  ;;  %v469_v50 = vpop.f32.mrb[2].mxu1 }
 0x10d   : > { %v748_v43 = vmul.f32 -1.442695, %v472_v39  ;;  %v429_v44 = vpop.f32.mrb[3].mxu0  ;;  %v470_v51 = vpop.f32.mrb[3].mxu1 }
 0x10e   : > { %v749_v45 = vmul.f32 -1.442695, %v473_v41  ;;  %v750_v53 = vmul.f32 -1.442695, %v475_v49 }
 0x10f   : > { %836 = vpow2.f32 %v748_v43 }
 0x110   : > { %838 = vpow2.f32 %v749_v45 }
 0x111   : > { %840 = vpow2.f32 %v750_v53 }
 0x112   : > { %842 = vtanh.f32 %v474_v54 }
 0x119   : > { %v837_v55 = vpop.eup %836 }
 0x11a   : > { %v839_v56 = vpop.eup %838  ;;  %v479_v57 = vadd.f32 1.0, %v837_v55 }
 0x11b   : > { %v485_v58 = vadd.f32 1.0, %v839_v56  ;;  %v841_v59 = vpop.eup %840 }
 0x11c   : > { %844 = vrcp.f32 %v479_v57  ;;  %v843_v60 = vpop.eup %842  ;;  %v492_v63 = vadd.f32 1.0, %v841_v59 }
 0x11d   : > { %846 = vrcp.f32 %v485_v58 }
 0x11e   : > { %848 = vrcp.f32 %v492_v63 }
 0x126   : > { %v845_v62 = vpop.eup %844 }
 0x127   : > { %v847_v0 = vpop.eup %846  ;;  %v496_v1 = vmul.f32 %v845_v62, %v843_v60 }
 0x128   : > { %v495_v2 = vmul.f32 %v847_v0, %v224_v61  ;;  %v849_v4 = vpop.eup %848 }
 0x12a   : > { %v497_v3 = vadd.f32 %v496_v1, %v495_v2 }
 0x12c   : > { %850 = vtanh.f32 %v497_v3 }
 0x136   : > { %v851_v5 = vpop.eup %850 }
 0x137   : > { %v499_v6 = vmul.f32 %v851_v5, %v849_v4 }
 0x139   : > { %500 = vst [vmem:[%s935_s21] sm:$0xff] %v499_v6  ;;  %v506_v7 = vpack.c.bf16 %v499_v6, %v499_v6 }
 0x13b   : > { %540 = vmatmul.mubr.bf16.vlgmr.msra.gmra.mrb[4].mxu0 %v506_v7  ;;  %581 = vmatmul.mubr.bf16.vlgmr.msra.gmra.mrb[4].mxu1 %v506_v7 }
 0x20e   : > { %v541_v10 = vpop.f32.mrb[4].mxu0  ;;  %v582_v11 = vpop.f32.mrb[4].mxu1 }
 0x20f   : > { %v589_v12 = vadd.f32 %v751_v8, %v541_v10  ;;  %v543_v13 = vpop.f32.mrb[5].mxu0  ;;  %v584_v14 = vpop.f32.mrb[5].mxu1  ;;  %v591_v26 = vadd.f32 %v753_v24, %v582_v11 }
 0x210   : > { %v590_v15 = vadd.f32 %v752_v9, %v543_v13  ;;  %v545_v16 = vpop.f32.mrb[6].mxu0  ;;  %v586_v17 = vpop.f32.mrb[6].mxu1  ;;  %v592_v23 = vadd.f32 %v754_v22, %v584_v14 }
 0x211   : > { %v755_v18 = vmul.f32 -1.442695, %v589_v12  ;;  %v546_v19 = vpop.f32.mrb[7].mxu0  ;;  %v587_v20 = vpop.f32.mrb[7].mxu1 }
 0x212   : > { %v756_v21 = vmul.f32 -1.442695, %v590_v15  ;;  %v757_v25 = vmul.f32 -1.442695, %v592_v23 }
 0x213   : > { %852 = vpow2.f32 %v755_v18 }
 0x214   : > { %854 = vpow2.f32 %v756_v21 }
 0x215   : > { %856 = vpow2.f32 %v757_v25 }
 0x216   : > { %858 = vtanh.f32 %v591_v26 }
 0x21d   : > { %v853_v27 = vpop.eup %852 }
 0x21e   : > { %v855_v28 = vpop.eup %854  ;;  %v596_v29 = vadd.f32 1.0, %v853_v27 }
 0x21f   : > { %v602_v30 = vadd.f32 1.0, %v855_v28  ;;  %v857_v31 = vpop.eup %856 }
 0x220   : > { %860 = vrcp.f32 %v596_v29  ;;  %v859_v32 = vpop.eup %858  ;;  %v609_v36 = vadd.f32 1.0, %v857_v31 }
 0x221   : > { %862 = vrcp.f32 %v602_v30 }
 0x222   : > { %864 = vrcp.f32 %v609_v36 }
 0x22a   : > { %v861_v33 = vpop.eup %860 }
 0x22b   : > { %v863_v34 = vpop.eup %862  ;;  %v613_v35 = vmul.f32 %v861_v33, %v859_v32 }
 0x22c   : > { %v612_v37 = vmul.f32 %v863_v34, %v497_v3  ;;  %v865_v39 = vpop.eup %864 }
 0x22e   : > { %v614_v38 = vadd.f32 %v613_v35, %v612_v37 }
 0x230   : > { %866 = vtanh.f32 %v614_v38  ;;  %620 = vst [vmem:[#allocation3] sm:$0xff] %v614_v38 }
 0x23a   : > { %v867_v40 = vpop.eup %866 }
 0x23b   : > { %v616_v41 = vmul.f32 %v867_v40, %v865_v39 }
 0x23d   : > { %758 = vst [vmem:[%s935_s21 + $0x8] sm:$0xff] %v616_v41  ;;  %619 = vst [vmem:[#allocation2] sm:$0xff] %v616_v41 }
 0x23e PF: > { %s12_s11 = sadd.s32 1, %s890_s11   ;;  %s1091_s9 = smov %s886_s10 }
 0x23f   : > { %p9_p6 = scmp.ge.s32.totalorder %s12_s11, 6   ;;  %s1092_s10 = smov %s1094_s12 }
 0x241   :  { %11 = sbr.rel (!%p9_p6) target bundleno = 2 (0x2), region = 64 }

</bundles_post_ra>
